<compile_context>
chip_gen: v5e
topology: v5e:2x2
jax: 0.10.0
libtpu: 0.0.40
codegen_flags: <defaults>
</compile_context>

<pallas_src>
import functools

import jax
import jax.numpy as jnp
from jax import lax
from jax.experimental import pallas as pl
from jax.experimental.pallas import tpu as pltpu


def _round_up(v, m):
    return -(-v // m) * m


def _repconv_kernel(x_ref, w_ref, b_ref, m_ref, o_ref, *, img_w):
    """One (sample, C2-tile) block of the re-parameterized RepConv.

    x_ref : (1, C1, HWp)   flattened channels-first input, zero-padded to HWp lanes
    w_ref : (9, TC2, C1)   per-tap fused weights (BN folded, branches summed)
    b_ref : (TC2, 1)       fused bias (f32)
    m_ref : (9, 1, HWp)    0/1 tap validity masks ('same' padding + lane padding)
    o_ref : (1, TC2, HWp)  output tile (lane-dense, unmasked stores)
    """
    x = x_ref[0]                                   # (C1, HWp)
    hwp = x.shape[-1]
    acc = None
    for t in range(9):                             # static unrolled 9-tap accumulation
        dy, dx = divmod(t, 3)
        off = (dy - 1) * img_w + (dx - 1)          # flat-spatial tap offset
        if off == 0:
            xt = x                                 # centre tap: no roll, no mask needed
        else:
            # want xt[p] = x[p + off]; roll gives out[p] = x[(p - r) % hwp] -> r = -off
            xt = pltpu.roll(x, shift=(-off) % hwp, axis=1)
            xt = xt * m_ref[t]                     # zero taps falling outside the image
        part = jnp.dot(w_ref[t], xt, preferred_element_type=jnp.float32)  # MXU, f32 acc
        acc = part if acc is None else acc + part
    y = acc + b_ref[...]                           # (TC2, 1) bias broadcast
    sig = 0.5 * (jnp.tanh(0.5 * y) + 1.0)          # sigmoid with a single EUP push
    o_ref[0] = (y * sig).astype(o_ref.dtype)


def _fold_bn(w, gamma, beta, mean, var, eps):
    """Fold eval-mode BatchNorm into a conv weight + bias (exact)."""
    scale = gamma / jnp.sqrt(var + eps)
    return w * scale[:, None, None, None], beta - mean * scale


@functools.partial(jax.jit, static_argnames=("eps", "out_dtype", "compute_dtype"))
def repconv_forward(x, w3, g3, b3, m3, v3, w1, g1, b1, m1, v1,
                    idg=None, idb=None, idm=None, idv=None,
                    *, eps=1e-5, out_dtype=None, compute_dtype=jnp.bfloat16):
    """RepConv forward (eval-mode BN): SiLU(conv3x3_bn(x) + conv1x1_bn(x) [+ bn_id(x)]).

    x  : (N, C1, H, W) NCHW input
    w3 : (C2, C1, 3, 3) conv1 weight;  g3/b3/m3/v3: its BN gamma/beta/mean/var
    w1 : (C2, C1, 1, 1) conv2 weight;  g1/b1/m1/v1: its BN gamma/beta/mean/var
    idg/idb/idm/idv : optional identity-BN branch (only valid when C1 == C2)
    Returns (N, C2, H, W) NCHW, matching the PyTorch module's forward().
    """
    N, C1, H, W = x.shape
    C2 = w3.shape[0]
    HW = H * W
    out_dtype = x.dtype if out_dtype is None else out_dtype
    # TODO(synk): stride s != 1 and groups g != 1 are not implemented
    # (RepConv asserts k == 3, p == 1; module defaults are s = 1, g = 1).

    # ---- re-parameterization (exactly RepConv.get_equivalent_kernel_bias) ----
    w3f, bias3 = _fold_bn(w3, g3, b3, m3, v3, eps)
    w1f, bias1 = _fold_bn(w1, g1, b1, m1, v1, eps)
    w_eq = w3f + jnp.pad(w1f, ((0, 0), (0, 0), (1, 1), (1, 1)))   # 1x1 -> centre of 3x3
    b_eq = bias3 + bias1
    if idg is not None:                     # identity-BN branch (bn=True, c1==c2, s==1)
        assert C1 == C2, "identity-BN branch requires c1 == c2"
        sid = idg / jnp.sqrt(idv + eps)
        w_eq = w_eq.at[jnp.arange(C2), jnp.arange(C1), 1, 1].add(sid)
        b_eq = b_eq + (idb - idm * sid)

    # ---- operand layout: channels-first, lane-dense, bf16 MXU feeds ----------
    HWp = _round_up(HW, 128)            # lane-dense stores; pad sliced off below
    C2p = _round_up(C2, 16)             # sublane-friendly output channel count
    cdt, odt = jnp.dtype(compute_dtype), jnp.dtype(out_dtype)

    x_flat = jnp.pad(x.reshape(N, C1, HW).astype(compute_dtype),
                     ((0, 0), (0, 0), (0, HWp - HW)))
    w_taps = jnp.transpose(w_eq, (2, 3, 0, 1)).reshape(9, C2, C1)   # tap t = dy*3 + dx
    w_taps = jnp.pad(w_taps, ((0, 0), (0, C2p - C2), (0, 0))).astype(compute_dtype)
    b_col = jnp.pad(b_eq, (0, C2p - C2)).reshape(C2p, 1).astype(jnp.float32)

    # 0/1 validity masks for the shifted taps ('same' zero padding + lane padding).
    p = jnp.arange(HWp)
    py, px = p // W, p % W
    in_img = p < HW
    masks = [in_img & (py + dy - 1 >= 0) & (py + dy - 1 < H)
             & (px + dx - 1 >= 0) & (px + dx - 1 < W)
             for dy in range(3) for dx in range(3)]
    mask = jnp.stack(masks, 0).astype(compute_dtype).reshape(9, 1, HWp)

    # ---- output-channel tile chosen from an explicit VMEM budget -------------
    cb, ob = cdt.itemsize, odt.itemsize
    def footprint(tc2):
        return (2 * C1 * HWp * cb                        # x block (double-buffered)
                + 2 * 9 * HWp * cb                       # masks
                + 2 * (9 * tc2 * C1 * cb + tc2 * 4)      # weights + bias
                + 2 * tc2 * HWp * ob                     # output block
                + 2 * tc2 * HWp * 4                      # f32 accumulator / epilogue temps
                + 2 * C1 * HWp * cb)                     # rolled-tap temporaries
    budget = 14 * 1024 * 1024            # fits v5e's 16 MiB default scoped VMEM
    divs = [d for d in range(8, C2p + 1, 8) if C2p % d == 0]
    tc2 = divs[0]
    for d in reversed(divs):
        if footprint(d) <= budget:
            tc2 = d
            break
    # TODO(synk): if even the smallest C2 tile exceeds the budget (very large C1*H*W),
    # add halo-based spatial tiling instead of one full-HW block per sample.
    if N * (C2p // tc2) < 2:             # keep both v7x TensorCores busy when possible
        smaller = [d for d in divs if d < tc2 and footprint(d) <= budget]
        if smaller:
            tc2 = smaller[-1]

    out_flat = pl.pallas_call(
        functools.partial(_repconv_kernel, img_w=W),
        out_shape=jax.ShapeDtypeStruct((N, C2p, HWp), out_dtype),
        grid_spec=pltpu.PrefetchScalarGridSpec(
            num_scalar_prefetch=0,
            grid=(N, C2p // tc2),
            in_specs=[
                pl.BlockSpec((1, C1, HWp), lambda n, j: (n, 0, 0)),   # x (resident over j)
                pl.BlockSpec((9, tc2, C1), lambda n, j: (0, j, 0)),   # fused tap weights
                pl.BlockSpec((tc2, 1), lambda n, j: (j, 0)),          # fused bias
                pl.BlockSpec((9, 1, HWp), lambda n, j: (0, 0, 0)),    # tap masks (resident)
            ],
            out_specs=pl.BlockSpec((1, tc2, HWp), lambda n, j: (n, j, 0)),
        ),
        compiler_params=pltpu.CompilerParams(
            dimension_semantics=("parallel", "parallel")),            # megacore sharding
    )(x_flat, w_taps, b_col, mask)

    return out_flat[:, :C2, :HW].reshape(N, C2, H, W)


if __name__ == "__main__":
    # Module config: RepConv(c1=4, c2=8, k=3, s=1, p=1, g=1, act=True, bn=False)
    c1, c2 = 4, 8
    N, H, W = 2, 16, 16
    eps = 1e-5

    key = jax.random.PRNGKey(0)
    ks = jax.random.split(key, 11)
    x = jax.random.normal(ks[0], (N, c1, H, W), dtype=jnp.float32)
    w3 = jax.random.normal(ks[1], (c2, c1, 3, 3), dtype=jnp.float32) * 0.1
    w1 = jax.random.normal(ks[2], (c2, c1, 1, 1), dtype=jnp.float32) * 0.1
    g3 = 1.0 + 0.1 * jax.random.normal(ks[3], (c2,), dtype=jnp.float32)
    b3 = 0.1 * jax.random.normal(ks[4], (c2,), dtype=jnp.float32)
    m3 = 0.05 * jax.random.normal(ks[5], (c2,), dtype=jnp.float32)
    v3 = 1.0 + 0.1 * jax.random.uniform(ks[6], (c2,), dtype=jnp.float32)
    g1 = 1.0 + 0.1 * jax.random.normal(ks[7], (c2,), dtype=jnp.float32)
    b1 = 0.1 * jax.random.normal(ks[8], (c2,), dtype=jnp.float32)
    m1 = 0.05 * jax.random.normal(ks[9], (c2,), dtype=jnp.float32)
    v1 = 1.0 + 0.1 * jax.random.uniform(ks[10], (c2,), dtype=jnp.float32)

    # Pure-JAX reference: the un-fused module forward (conv3x3+BN + conv1x1+BN, SiLU).
    def ref_forward(xx):
        dn = ("NCHW", "OIHW", "NCHW")
        y1 = lax.conv_general_dilated(xx, w3, (1, 1), ((1, 1), (1, 1)),
                                      dimension_numbers=dn,
                                      precision=lax.Precision.HIGHEST)
        y1 = ((y1 - m3[None, :, None, None]) / jnp.sqrt(v3 + eps)[None, :, None, None]
              * g3[None, :, None, None] + b3[None, :, None, None])
        y2 = lax.conv_general_dilated(xx, w1, (1, 1), ((0, 0), (0, 0)),
                                      dimension_numbers=dn,
                                      precision=lax.Precision.HIGHEST)
        y2 = ((y2 - m1[None, :, None, None]) / jnp.sqrt(v1 + eps)[None, :, None, None]
              * g1[None, :, None, None] + b1[None, :, None, None])
        y = y1 + y2                 # identity-BN branch is None (bn=False default)
        return y * jax.nn.sigmoid(y)

    ref = ref_forward(x)

    # f32 MXU path: strict correctness check.
    out_f32 = repconv_forward(x, w3, g3, b3, m3, v3, w1, g1, b1, m1, v1,
                              eps=eps, compute_dtype=jnp.float32)
    out_f32 = jax.block_until_ready(out_f32)
    assert out_f32.shape == (N, c2, H, W), out_f32.shape
    err32 = float(jnp.max(jnp.abs(out_f32 - ref)))
    assert jnp.allclose(out_f32, ref, atol=1e-2, rtol=1e-2), err32

    # bf16 MXU path (default / production setting): looser tolerance.
    out_bf16 = repconv_forward(x, w3, g3, b3, m3, v3, w1, g1, b1, m1, v1,
                               eps=eps, compute_dtype=jnp.bfloat16)
    out_bf16 = jax.block_until_ready(out_bf16)
    assert out_bf16.shape == (N, c2, H, W), out_bf16.shape
    err16 = float(jnp.max(jnp.abs(out_bf16 - ref)))
    assert jnp.allclose(out_bf16, ref, atol=6e-2, rtol=5e-2), err16

    print("KERNEL_OK")
</pallas_src>

<mosaic_0001>
module attributes {stable_mosaic.version = 11 : i64} {
  func.func @_repconv_kernel(%arg0: i32, %arg1: i32, %arg2: memref<1x4x256xf32, #tpu.memory_space<vmem>>, %arg3: memref<9x16x4xf32, #tpu.memory_space<vmem>>, %arg4: memref<16x1xf32, #tpu.memory_space<vmem>>, %arg5: memref<9x1x256xf32, #tpu.memory_space<vmem>>, %arg6: memref<1x16x256xf32, #tpu.memory_space<vmem>>) attributes {dimension_semantics = [#tpu.dimension_semantics<parallel>, #tpu.dimension_semantics<parallel>], iteration_bounds = array<i64: 2, 1>, scalar_prefetch = 0 : i64, scratch_operands = 0 : i64, tpu.core_type = #tpu.core_type<tc>, window_params = [{transform_indices = @transform_0, window_bounds = array<i64: 1, 4, 256>}, {transform_indices = @transform_1, window_bounds = array<i64: 9, 16, 4>}, {transform_indices = @transform_2, window_bounds = array<i64: 16, 1>}, {pipeline_mode = #tpu.pipeline_mode<synchronous>, transform_indices = @transform_3, window_bounds = array<i64: 9, 1, 256>}, {transform_indices = @transform_4, window_bounds = array<i64: 1, 16, 256>}]} {
    %c0 = arith.constant 0 : index
    %c0_0 = arith.constant 0 : index
    %c0_1 = arith.constant 0 : index
    %0 = vector.load %arg2[%c0, %c0_0, %c0_1] : memref<1x4x256xf32, #tpu.memory_space<vmem>>, vector<1x4x256xf32>
    %1 = vector.shape_cast %0 : vector<1x4x256xf32> to vector<4x256xf32>
    %c17_i32 = arith.constant 17 : i32
    %2 = tpu.dynamic_rotate %1 by %c17_i32 dim 1 : vector<4x256xf32>, i32 -> vector<4x256xf32>
    %c0_2 = arith.constant 0 : index
    %c0_3 = arith.constant 0 : index
    %c0_4 = arith.constant 0 : index
    %3 = vector.load %arg5[%c0_2, %c0_3, %c0_4] : memref<9x1x256xf32, #tpu.memory_space<vmem>>, vector<1x1x256xf32>
    %4 = vector.shape_cast %3 : vector<1x1x256xf32> to vector<1x256xf32>
    %5 = vector.broadcast %4 : vector<1x256xf32> to vector<4x256xf32>
    %6 = arith.mulf %2, %5 : vector<4x256xf32>
    %c0_5 = arith.constant 0 : index
    %c0_6 = arith.constant 0 : index
    %c0_7 = arith.constant 0 : index
    %7 = vector.load %arg3[%c0_5, %c0_6, %c0_7] : memref<9x16x4xf32, #tpu.memory_space<vmem>>, vector<1x16x4xf32>
    %8 = vector.shape_cast %7 : vector<1x16x4xf32> to vector<16x4xf32>
    %cst = arith.constant dense<0.000000e+00> : vector<16x256xf32>
    %9 = tpu.matmul %8, %6, %cst {dimension_numbers = #tpu.dot_dimension_numbers<[1], [0], [0], [1], [0, 0, 1, 1], [], []>} : vector<16x4xf32>, vector<4x256xf32>, vector<16x256xf32> -> vector<16x256xf32>
    %c16_i32 = arith.constant 16 : i32
    %10 = tpu.dynamic_rotate %1 by %c16_i32 dim 1 : vector<4x256xf32>, i32 -> vector<4x256xf32>
    %c1 = arith.constant 1 : index
    %c0_8 = arith.constant 0 : index
    %c0_9 = arith.constant 0 : index
    %11 = vector.load %arg5[%c1, %c0_8, %c0_9] : memref<9x1x256xf32, #tpu.memory_space<vmem>>, vector<1x1x256xf32>
    %12 = vector.shape_cast %11 : vector<1x1x256xf32> to vector<1x256xf32>
    %13 = vector.broadcast %12 : vector<1x256xf32> to vector<4x256xf32>
    %14 = arith.mulf %10, %13 : vector<4x256xf32>
    %c1_10 = arith.constant 1 : index
    %c0_11 = arith.constant 0 : index
    %c0_12 = arith.constant 0 : index
    %15 = vector.load %arg3[%c1_10, %c0_11, %c0_12] : memref<9x16x4xf32, #tpu.memory_space<vmem>>, vector<1x16x4xf32>
    %16 = vector.shape_cast %15 : vector<1x16x4xf32> to vector<16x4xf32>
    %cst_13 = arith.constant dense<0.000000e+00> : vector<16x256xf32>
    %17 = tpu.matmul %16, %14, %cst_13 {dimension_numbers = #tpu.dot_dimension_numbers<[1], [0], [0], [1], [0, 0, 1, 1], [], []>} : vector<16x4xf32>, vector<4x256xf32>, vector<16x256xf32> -> vector<16x256xf32>
    %18 = arith.addf %9, %17 : vector<16x256xf32>
    %c15_i32 = arith.constant 15 : i32
    %19 = tpu.dynamic_rotate %1 by %c15_i32 dim 1 : vector<4x256xf32>, i32 -> vector<4x256xf32>
    %c2 = arith.constant 2 : index
    %c0_14 = arith.constant 0 : index
    %c0_15 = arith.constant 0 : index
    %20 = vector.load %arg5[%c2, %c0_14, %c0_15] : memref<9x1x256xf32, #tpu.memory_space<vmem>>, vector<1x1x256xf32>
    %21 = vector.shape_cast %20 : vector<1x1x256xf32> to vector<1x256xf32>
    %22 = vector.broadcast %21 : vector<1x256xf32> to vector<4x256xf32>
    %23 = arith.mulf %19, %22 : vector<4x256xf32>
    %c2_16 = arith.constant 2 : index
    %c0_17 = arith.constant 0 : index
    %c0_18 = arith.constant 0 : index
    %24 = vector.load %arg3[%c2_16, %c0_17, %c0_18] : memref<9x16x4xf32, #tpu.memory_space<vmem>>, vector<1x16x4xf32>
    %25 = vector.shape_cast %24 : vector<1x16x4xf32> to vector<16x4xf32>
    %cst_19 = arith.constant dense<0.000000e+00> : vector<16x256xf32>
    %26 = tpu.matmul %25, %23, %cst_19 {dimension_numbers = #tpu.dot_dimension_numbers<[1], [0], [0], [1], [0, 0, 1, 1], [], []>} : vector<16x4xf32>, vector<4x256xf32>, vector<16x256xf32> -> vector<16x256xf32>
    %27 = arith.addf %18, %26 : vector<16x256xf32>
    %c1_i32 = arith.constant 1 : i32
    %28 = tpu.dynamic_rotate %1 by %c1_i32 dim 1 : vector<4x256xf32>, i32 -> vector<4x256xf32>
    %c3 = arith.constant 3 : index
    %c0_20 = arith.constant 0 : index
    %c0_21 = arith.constant 0 : index
    %29 = vector.load %arg5[%c3, %c0_20, %c0_21] : memref<9x1x256xf32, #tpu.memory_space<vmem>>, vector<1x1x256xf32>
    %30 = vector.shape_cast %29 : vector<1x1x256xf32> to vector<1x256xf32>
    %31 = vector.broadcast %30 : vector<1x256xf32> to vector<4x256xf32>
    %32 = arith.mulf %28, %31 : vector<4x256xf32>
    %c3_22 = arith.constant 3 : index
    %c0_23 = arith.constant 0 : index
    %c0_24 = arith.constant 0 : index
    %33 = vector.load %arg3[%c3_22, %c0_23, %c0_24] : memref<9x16x4xf32, #tpu.memory_space<vmem>>, vector<1x16x4xf32>
    %34 = vector.shape_cast %33 : vector<1x16x4xf32> to vector<16x4xf32>
    %cst_25 = arith.constant dense<0.000000e+00> : vector<16x256xf32>
    %35 = tpu.matmul %34, %32, %cst_25 {dimension_numbers = #tpu.dot_dimension_numbers<[1], [0], [0], [1], [0, 0, 1, 1], [], []>} : vector<16x4xf32>, vector<4x256xf32>, vector<16x256xf32> -> vector<16x256xf32>
    %36 = arith.addf %27, %35 : vector<16x256xf32>
    %c4 = arith.constant 4 : index
    %c0_26 = arith.constant 0 : index
    %c0_27 = arith.constant 0 : index
    %37 = vector.load %arg3[%c4, %c0_26, %c0_27] : memref<9x16x4xf32, #tpu.memory_space<vmem>>, vector<1x16x4xf32>
    %38 = vector.shape_cast %37 : vector<1x16x4xf32> to vector<16x4xf32>
    %cst_28 = arith.constant dense<0.000000e+00> : vector<16x256xf32>
    %39 = tpu.matmul %38, %1, %cst_28 {dimension_numbers = #tpu.dot_dimension_numbers<[1], [0], [0], [1], [0, 0, 1, 1], [], []>} : vector<16x4xf32>, vector<4x256xf32>, vector<16x256xf32> -> vector<16x256xf32>
    %40 = arith.addf %36, %39 : vector<16x256xf32>
    %c255_i32 = arith.constant 255 : i32
    %41 = tpu.dynamic_rotate %1 by %c255_i32 dim 1 : vector<4x256xf32>, i32 -> vector<4x256xf32>
    %c5 = arith.constant 5 : index
    %c0_29 = arith.constant 0 : index
    %c0_30 = arith.constant 0 : index
    %42 = vector.load %arg5[%c5, %c0_29, %c0_30] : memref<9x1x256xf32, #tpu.memory_space<vmem>>, vector<1x1x256xf32>
    %43 = vector.shape_cast %42 : vector<1x1x256xf32> to vector<1x256xf32>
    %44 = vector.broadcast %43 : vector<1x256xf32> to vector<4x256xf32>
    %45 = arith.mulf %41, %44 : vector<4x256xf32>
    %c5_31 = arith.constant 5 : index
    %c0_32 = arith.constant 0 : index
    %c0_33 = arith.constant 0 : index
    %46 = vector.load %arg3[%c5_31, %c0_32, %c0_33] : memref<9x16x4xf32, #tpu.memory_space<vmem>>, vector<1x16x4xf32>
    %47 = vector.shape_cast %46 : vector<1x16x4xf32> to vector<16x4xf32>
    %cst_34 = arith.constant dense<0.000000e+00> : vector<16x256xf32>
    %48 = tpu.matmul %47, %45, %cst_34 {dimension_numbers = #tpu.dot_dimension_numbers<[1], [0], [0], [1], [0, 0, 1, 1], [], []>} : vector<16x4xf32>, vector<4x256xf32>, vector<16x256xf32> -> vector<16x256xf32>
    %49 = arith.addf %40, %48 : vector<16x256xf32>
    %c241_i32 = arith.constant 241 : i32
    %50 = tpu.dynamic_rotate %1 by %c241_i32 dim 1 : vector<4x256xf32>, i32 -> vector<4x256xf32>
    %c6 = arith.constant 6 : index
    %c0_35 = arith.constant 0 : index
    %c0_36 = arith.constant 0 : index
    %51 = vector.load %arg5[%c6, %c0_35, %c0_36] : memref<9x1x256xf32, #tpu.memory_space<vmem>>, vector<1x1x256xf32>
    %52 = vector.shape_cast %51 : vector<1x1x256xf32> to vector<1x256xf32>
    %53 = vector.broadcast %52 : vector<1x256xf32> to vector<4x256xf32>
    %54 = arith.mulf %50, %53 : vector<4x256xf32>
    %c6_37 = arith.constant 6 : index
    %c0_38 = arith.constant 0 : index
    %c0_39 = arith.constant 0 : index
    %55 = vector.load %arg3[%c6_37, %c0_38, %c0_39] : memref<9x16x4xf32, #tpu.memory_space<vmem>>, vector<1x16x4xf32>
    %56 = vector.shape_cast %55 : vector<1x16x4xf32> to vector<16x4xf32>
    %cst_40 = arith.constant dense<0.000000e+00> : vector<16x256xf32>
    %57 = tpu.matmul %56, %54, %cst_40 {dimension_numbers = #tpu.dot_dimension_numbers<[1], [0], [0], [1], [0, 0, 1, 1], [], []>} : vector<16x4xf32>, vector<4x256xf32>, vector<16x256xf32> -> vector<16x256xf32>
    %58 = arith.addf %49, %57 : vector<16x256xf32>
    %c240_i32 = arith.constant 240 : i32
    %59 = tpu.dynamic_rotate %1 by %c240_i32 dim 1 : vector<4x256xf32>, i32 -> vector<4x256xf32>
    %c7 = arith.constant 7 : index
    %c0_41 = arith.constant 0 : index
    %c0_42 = arith.constant 0 : index
    %60 = vector.load %arg5[%c7, %c0_41, %c0_42] : memref<9x1x256xf32, #tpu.memory_space<vmem>>, vector<1x1x256xf32>
    %61 = vector.shape_cast %60 : vector<1x1x256xf32> to vector<1x256xf32>
    %62 = vector.broadcast %61 : vector<1x256xf32> to vector<4x256xf32>
    %63 = arith.mulf %59, %62 : vector<4x256xf32>
    %c7_43 = arith.constant 7 : index
    %c0_44 = arith.constant 0 : index
    %c0_45 = arith.constant 0 : index
    %64 = vector.load %arg3[%c7_43, %c0_44, %c0_45] : memref<9x16x4xf32, #tpu.memory_space<vmem>>, vector<1x16x4xf32>
    %65 = vector.shape_cast %64 : vector<1x16x4xf32> to vector<16x4xf32>
    %cst_46 = arith.constant dense<0.000000e+00> : vector<16x256xf32>
    %66 = tpu.matmul %65, %63, %cst_46 {dimension_numbers = #tpu.dot_dimension_numbers<[1], [0], [0], [1], [0, 0, 1, 1], [], []>} : vector<16x4xf32>, vector<4x256xf32>, vector<16x256xf32> -> vector<16x256xf32>
    %67 = arith.addf %58, %66 : vector<16x256xf32>
    %c239_i32 = arith.constant 239 : i32
    %68 = tpu.dynamic_rotate %1 by %c239_i32 dim 1 : vector<4x256xf32>, i32 -> vector<4x256xf32>
    %c8 = arith.constant 8 : index
    %c0_47 = arith.constant 0 : index
    %c0_48 = arith.constant 0 : index
    %69 = vector.load %arg5[%c8, %c0_47, %c0_48] : memref<9x1x256xf32, #tpu.memory_space<vmem>>, vector<1x1x256xf32>
    %70 = vector.shape_cast %69 : vector<1x1x256xf32> to vector<1x256xf32>
    %71 = vector.broadcast %70 : vector<1x256xf32> to vector<4x256xf32>
    %72 = arith.mulf %68, %71 : vector<4x256xf32>
    %c8_49 = arith.constant 8 : index
    %c0_50 = arith.constant 0 : index
    %c0_51 = arith.constant 0 : index
    %73 = vector.load %arg3[%c8_49, %c0_50, %c0_51] : memref<9x16x4xf32, #tpu.memory_space<vmem>>, vector<1x16x4xf32>
    %74 = vector.shape_cast %73 : vector<1x16x4xf32> to vector<16x4xf32>
    %cst_52 = arith.constant dense<0.000000e+00> : vector<16x256xf32>
    %75 = tpu.matmul %74, %72, %cst_52 {dimension_numbers = #tpu.dot_dimension_numbers<[1], [0], [0], [1], [0, 0, 1, 1], [], []>} : vector<16x4xf32>, vector<4x256xf32>, vector<16x256xf32> -> vector<16x256xf32>
    %76 = arith.addf %67, %75 : vector<16x256xf32>
    %c0_53 = arith.constant 0 : index
    %c0_54 = arith.constant 0 : index
    %77 = vector.load %arg4[%c0_53, %c0_54] : memref<16x1xf32, #tpu.memory_space<vmem>>, vector<16x1xf32>
    %78 = vector.broadcast %77 : vector<16x1xf32> to vector<16x256xf32>
    %79 = arith.addf %76, %78 : vector<16x256xf32>
    %cst_55 = arith.constant 5.000000e-01 : f32
    %80 = vector.broadcast %cst_55 : f32 to vector<16x256xf32>
    %81 = arith.mulf %80, %79 : vector<16x256xf32>
    %82 = math.tanh %81 : vector<16x256xf32>
    %cst_56 = arith.constant 1.000000e+00 : f32
    %83 = vector.broadcast %cst_56 : f32 to vector<16x256xf32>
    %84 = arith.addf %82, %83 : vector<16x256xf32>
    %cst_57 = arith.constant 5.000000e-01 : f32
    %85 = vector.broadcast %cst_57 : f32 to vector<16x256xf32>
    %86 = arith.mulf %85, %84 : vector<16x256xf32>
    %87 = arith.mulf %79, %86 : vector<16x256xf32>
    %c0_58 = arith.constant 0 : index
    %c0_59 = arith.constant 0 : index
    %c0_60 = arith.constant 0 : index
    %88 = vector.load %arg6[%c0_58, %c0_59, %c0_60] : memref<1x16x256xf32, #tpu.memory_space<vmem>>, vector<1x16x256xf32>
    %89 = vector.shape_cast %88 : vector<1x16x256xf32> to vector<16x256xf32>
    %90 = vector.shape_cast %87 : vector<16x256xf32> to vector<1x16x256xf32>
    tpu.vector_store %arg6[%c0_58, %c0_59, %c0_60], %90 {strides = array<i32>} : memref<1x16x256xf32, #tpu.memory_space<vmem>>, vector<1x16x256xf32>,
    return
  }
  func.func @transform_0(%arg0: i32, %arg1: i32) -> (i32, i32, i32) {
    %c0_i32 = arith.constant 0 : i32
    %c0_i32_0 = arith.constant 0 : i32
    %c0_i32_1 = arith.constant 0 : i32
    return %arg0, %c0_i32, %c0_i32_0 : i32, i32, i32
  }
  func.func @transform_1(%arg0: i32, %arg1: i32) -> (i32, i32, i32) {
    %c0_i32 = arith.constant 0 : i32
    %c0_i32_0 = arith.constant 0 : i32
    %c0_i32_1 = arith.constant 0 : i32
    return %c0_i32, %arg1, %c0_i32_0 : i32, i32, i32
  }
  func.func @transform_2(%arg0: i32, %arg1: i32) -> (i32, i32) {
    %c0_i32 = arith.constant 0 : i32
    %c0_i32_0 = arith.constant 0 : i32
    return %arg1, %c0_i32 : i32, i32
  }
  func.func @transform_3(%arg0: i32, %arg1: i32) -> (i32, i32, i32) {
    %c0_i32 = arith.constant 0 : i32
    %c0_i32_0 = arith.constant 0 : i32
    %c0_i32_1 = arith.constant 0 : i32
    %c0_i32_2 = arith.constant 0 : i32
    return %c0_i32, %c0_i32_0, %c0_i32_1 : i32, i32, i32
  }
  func.func @transform_4(%arg0: i32, %arg1: i32) -> (i32, i32, i32) {
    %c0_i32 = arith.constant 0 : i32
    %c0_i32_0 = arith.constant 0 : i32
    return %arg0, %arg1, %c0_i32 : i32, i32, i32
  }
}

</mosaic_0001>

<bundles_post_ra>
// kernel: repconv_forward.1
= control target key start
LH: loop header
LB: loop body
LE: loop exit
PB: predicated region body
PF: predicated region fallthrough
CT: control target
= control target key end

     0   :  { %s1370_s15 = smov 0   ;;  %s1372_s16 = smov 0   ;;  %s1563_s0 = inlined_call_operand.vmem [shape: f32[2,4,256], index: 0, kind: input, shape index: {}]   ;;  %s1564_s1 = inlined_call_operand.vmem [shape: f32[9,16,4], index: 1, kind: input, shape index: {}]   ;;  %s1565_s2 = inlined_call_operand.vmem [shape: f32[16,1], index: 2, kind: input, shape index: {}]   ;;  %s1566_s3 = inlined_call_operand.vmem [shape: f32[9,1,256], index: 3, kind: input, shape index: {}]   ;;  %s1567_s4 = inlined_call_operand.vmem [shape: f32[2,16,256], index: 4, kind: output, shape index: {}]  }
   0x1   :  { %s1374_s17 = smov 0  }
   0x2 LB: > { %s26_s18 = sadd.s32 1, %s1330_s16  ;;  %p1180_p0 = scmp.ge.s32.totalorder %s1334_s17, 1  ;;  %s1334_s17 = sphi %s1374_s17, %s14_s17   ;;  %s1330_s16 = sphi %s1372_s16, %s1569_s16   ;;  %s1326_s15 = sphi %s1370_s15, %s1568_s15  }
   0x3   : > { %p28_p1 = scmp.ge.s32.totalorder %s26_s18, 2  ;;  %p198_p2 = scmp.lt.s32.totalorder %s1334_s17, 3 }
   0x5   : > { %s1571_s18 = smov (%p28_p1, %s26_s18), 0  ;;  %p199_p3 = pnand %p1180_p0, %p198_p2 }
   0x6   : > { %p239_p4 = scmp.lt.s32.totalorder (!%p199_p3), %s1326_s15, 1  ;;  %s1336_s23 = smov (!%p199_p3), 17  }
   0x7   : > { %202 = sbr.rel (%p199_p3) target bundleno = 379 (0x17b), region = 36  ;;  %s1337_s24 = smov (!%p199_p3), 16  }
   0x8   : > { %s1338_s25 = smov (!%p199_p3), 15   ;;  %s1339_s26 = smov (!%p199_p3), 1  }
   0x9   : > { %s1340_s27 = smov (!%p199_p3), 127   ;;  %s1341_s28 = smov (!%p199_p3), 113  }
   0xa   : > { %s1342_s29 = smov (!%p199_p3), 112   ;;  %s1343_s30 = smov (!%p199_p3), 111  }
   0xc   : > { %s1573_s15 = smov (!%p239_p4, %s1326_s15), 1  ;;  %v278_v21 = vlaneseq  ;;  %v1185_v24 = vld [vmem:[%s1566_s3 + $0x2] sm:$0x3]  ;;  %v283_v25 = vld [vmem:[%s1566_s3] sm:$0x3]  ;;  %vm324_vm3 = vcmask 1043456  }
   0xd   : > { %s1264_s19 = sshll.u32 %s1573_s15, 3  ;;  %v1200_v26 = vld [vmem:[%s1566_s3 + $0x4] sm:$0x3]  ;;  %v308_v29 = vperm.slane %v1185_v24, 0  ;;  %v309_v30 = vperm.slane %v1185_v24, 1  ;;  %v285_v31 = vperm.slane %v283_v25, 0 }
   0xe   : > { %s243_s22 = scalar_lea.vmem %s1563_s0, %s1264_s19  ;;  %v1398_v23 = vand.u32 127, %v278_v21  ;;  %v286_v32 = vperm.slane %v283_v25, 1  ;;  %v450_v33 = vperm.slane %v1200_v26, 0  ;;  %v451_v37 = vperm.slane %v1200_v26, 1  ;;  %v1187_v46 = vld [vmem:[%s1564_s1 + $0x18] sm:$0xff]  ;;  %v1186_v52 = vld [vmem:[%s1564_s1 + $0x10] sm:$0xff] }
   0xf   : > { %v267_v0 = vld [vmem:[%s243_s22] sm:$0xff]  ;;  %vm317_vm4 = vcmask 31744   ;;  %v292_v61 = vld [vmem:[%s1564_s1 + $0x8] sm:$0xff]  ;;  %s1265_s21 = sshll.u32 %s1573_s15, 5 }
  0x10   : > { %269 = vst [vmem:[#allocation1] ss:$2 sm:$0xff] %v267_v0  ;;  %vm280_vm0 = vcmp.lt.s32.totalorder %v1398_v23, 17  ;;  %vm302_vm1 = vcmp.lt.s32.totalorder %v1398_v23, 16  ;;  %vm444_vm2 = vcmp.lt.s32.totalorder %v1398_v23, 15  ;;  %vm530_vm5 = vcmp.lt.s32.totalorder %v1398_v23, 1 }
  0x11   : > { %v1209_v47 = vld [vmem:[%s1566_s3 + $0x6] sm:$0x3]  ;;  %v1226_v62 = vld [vmem:[%s1566_s3 + $0xa] sm:$0x3]  ;;  %vm682_vm6 = vcmp.lt.s32.totalorder %v1398_v23, 127  ;;  %vm768_vm7 = vcmp.lt.s32.totalorder %v1398_v23, 113 }
  0x12   : > { %v536_v50 = vperm.slane %v1209_v47, 0  ;;  %v537_v51 = vperm.slane %v1209_v47, 1  ;;  %v291_v59 = vld [vmem:[%s1564_s1] sm:$0xff]  ;;  %vm854_vm8 = vcmp.lt.s32.totalorder %v1398_v23, 112  ;;  %v1219_v24 = vld [vmem:[%s1564_s1 + $0x48] sm:$0xff]  ;;  %vm940_vm9 = vcmp.lt.s32.totalorder %v1398_v23, 111 }
  0x13   : > { %v1201_v60 = vld [vmem:[%s1564_s1 + $0x20] sm:$0xff]  ;;  %v1228_v23 = vld [vmem:[%s1564_s1 + $0x58] sm:$0xff] }
  0x14   : > { %v1254_v47 = vld [vmem:[%s1564_s1 + $0x80] sm:$0xff] }
  0x17   : > { %v270_v1 = vld.sshfl [vmem:[#allocation1] sm:$0xff pattern:$0x75316420]  ;;  %v271_v2 = vld.sshfl [vmem:[#allocation1 + $0x8] sm:$0xff pattern:$0x75316420] }
  0x18   : > { %274 = vrot.lane.b32.xlu1 %v270_v1, %s1336_s23  ;;  %293 = vst [vmem:[#allocation1] ss:$2 sm:$0xff] %v267_v0  ;;  %v689_v1 = vperm.slane %v1226_v62, 1 }
  0x1f   : > { %v294_v3 = vld.sshfl [vmem:[#allocation1] sm:$0xff pattern:$0x75316420]  ;;  %v295_v4 = vld.sshfl [vmem:[#allocation1 + $0x8] sm:$0xff pattern:$0x75316420] }
  0x20   : > { %298 = vrot.lane.b32.xlu0 %v294_v3, %s1337_s24  ;;  %276 = vrot.lane.b32.xlu1 %v271_v2, %s1336_s23  ;;  %435 = vst [vmem:[#allocation1] ss:$2 sm:$0xff] %v267_v0  ;;  %v1202_v2 = vld [vmem:[%s1564_s1 + $0x28] sm:$0xff] }
  0x27   : > { %v436_v5 = vld.sshfl [vmem:[#allocation1] sm:$0xff pattern:$0x75316420]  ;;  %v437_v6 = vld.sshfl [vmem:[#allocation1 + $0x8] sm:$0xff pattern:$0x75316420] }
  0x28   : > { %300 = vrot.lane.b32.xlu0 %v295_v4, %s1337_s24  ;;  %521 = vst [vmem:[#allocation1] ss:$2 sm:$0xff] %v267_v0  ;;  %440 = vrot.lane.b32.xlu2 %v436_v5, %s1338_s25  ;;  %s265_s24 = scalar_lea.vmem %s1567_s4, %s1265_s21 }
  0x2f   : > { %v523_v7 = vld.sshfl [vmem:[#allocation1 + $0x8] sm:$0xff pattern:$0x75316420]  ;;  %v522_v8 = vld.sshfl [vmem:[#allocation1] sm:$0xff pattern:$0x75316420] }
  0x30   : > { %528 = vrot.lane.b32.xlu1 %v523_v7, %s1339_s26  ;;  %526 = vrot.lane.b32.xlu0 %v522_v8, %s1339_s26  ;;  %610 = vst [vmem:[#allocation1] ss:$2 sm:$0xff] %v267_v0  ;;  %v1210_v8 = vld [vmem:[%s1564_s1 + $0x30] sm:$0xff] }
  0x31   : > { %442 = vrot.lane.b32.xlu2 %v437_v6, %s1338_s25 }
  0x37   : > { %v1394_v9 = vld.sshfl [vmem:[#allocation1] sm:$0xff pattern:$0x75316420]  ;;  %v1396_v10 = vld.sshfl [vmem:[#allocation1 + $0x8] sm:$0xff pattern:$0x75316420] }
  0x38   : > { %673 = vst [vmem:[#allocation1] ss:$2 sm:$0xff] %v267_v0 }
  0x3f   : > { %v675_v11 = vld.sshfl [vmem:[#allocation1 + $0x8] sm:$0xff pattern:$0x75316420]  ;;  %v674_v12 = vld.sshfl [vmem:[#allocation1] sm:$0xff pattern:$0x75316420] }
  0x40   : > { %680 = vrot.lane.b32.xlu0 %v675_v11, %s1340_s27  ;;  %759 = vst [vmem:[#allocation1] ss:$2 sm:$0xff] %v267_v0  ;;  %678 = vrot.lane.b32.xlu2 %v674_v12, %s1340_s27 }
  0x47   : > { %v760_v13 = vld.sshfl [vmem:[#allocation1] sm:$0xff pattern:$0x75316420]  ;;  %v761_v14 = vld.sshfl [vmem:[#allocation1 + $0x8] sm:$0xff pattern:$0x75316420] }
  0x48   : > { %764 = vrot.lane.b32.xlu1 %v760_v13, %s1341_s28  ;;  %845 = vst [vmem:[#allocation1] ss:$2 sm:$0xff] %v267_v0  ;;  %766 = vrot.lane.b32.xlu2 %v761_v14, %s1341_s28  ;;  %v1218_v13 = vld [vmem:[%s1564_s1 + $0x40] sm:$0xff] }
  0x4f   : > { %v847_v15 = vld.sshfl [vmem:[#allocation1 + $0x8] sm:$0xff pattern:$0x75316420]  ;;  %v846_v16 = vld.sshfl [vmem:[#allocation1] sm:$0xff pattern:$0x75316420] }
  0x50   : > { %852 = vrot.lane.b32.xlu1 %v847_v15, %s1342_s29  ;;  %850 = vrot.lane.b32.xlu0 %v846_v16, %s1342_s29  ;;  %931 = vst [vmem:[#allocation1] ss:$2 sm:$0xff] %v267_v0  ;;  %v688_v0 = vperm.slane %v1226_v62, 0 }
  0x57   : > { %v933_v17 = vld.sshfl [vmem:[#allocation1 + $0x8] sm:$0xff pattern:$0x75316420]  ;;  %v932_v18 = vld.sshfl [vmem:[#allocation1] sm:$0xff pattern:$0x75316420] }
  0x58   : > { %938 = vrot.lane.b32.xlu0 %v933_v17, %s1343_s30  ;;  %936 = vrot.lane.b32.xlu2 %v932_v18, %s1343_s30 }
  0x82   : > { %v441_v20 = vpop.permute.xlu2 %440 }
  0x8a   : > { %v275_v19 = vpop.permute.xlu1 %274 }
  0x8b   : > { %v443_v28 = vpop.permute.xlu2 %442 }
  0x8c   : > { %v445_v40 = vsel %vm444_vm2, %v441_v20, %v443_v28  ;;  %v446_v41 = vsel %vm444_vm2, %v443_v28, %v441_v20  ;;  %v1244_v20 = vld [vmem:[%s1566_s3 + $0xe] sm:$0x3] }
  0x8d   : > { %v454_v48 = vmul.f32 %v450_v33, %v446_v41  ;;  %v455_v49 = vmul.f32 %v451_v37, %v445_v40  ;;  %v860_v21 = vperm.slane %v1244_v20, 0  ;;  %v1344_v33 = vmov 0  }
  0x8e   : > { %1301 = vset.pattern.permute.xlu1 %v1344_v33  ;;  %1302 = vset.pattern.permute.xlu2 %v1344_v33 }
  0x8f   : > { %1303 = vset.pattern.permute.xlu0 %v1344_v33 }
  0x92   : > { %v299_v22 = vpop.permute.xlu0 %298  ;;  %v277_v27 = vpop.permute.xlu1 %276 }
  0x93   : > { %v281_v34 = vsel %vm280_vm0, %v275_v19, %v277_v27  ;;  %v282_v35 = vsel %vm280_vm0, %v277_v27, %v275_v19  ;;  %v1211_v19 = vld [vmem:[%s1564_s1 + $0x38] sm:$0xff] }
  0x94   : > { %v289_v44 = vmul.f32 %v285_v31, %v282_v35  ;;  %v290_v45 = vmul.f32 %v286_v32, %v281_v34  ;;  %v1227_v34 = vld [vmem:[%s1564_s1 + $0x50] sm:$0xff] }
  0x95   : > { %v1253_v35 = vld [vmem:[%s1566_s3 + $0x10] sm:$0x3] }
  0x96   : > { %v947_v37 = vperm.slane %v1253_v35, 1 }
  0x9a   : > { %v301_v36 = vpop.permute.xlu0 %300  ;;  %v679_v63 = vpop.permute.xlu2 %678 }
  0x9b   : > { %v303_v38 = vsel %vm302_vm1, %v299_v22, %v301_v36  ;;  %v304_v39 = vsel %vm302_vm1, %v301_v36, %v299_v22  ;;  %v861_v22 = vperm.slane %v1244_v20, 1  ;;  %v946_v36 = vperm.slane %v1253_v35, 0 }
  0x9c   : > { %v312_v42 = vmul.f32 %v308_v29, %v304_v39  ;;  %v313_v43 = vmul.f32 %v309_v30, %v303_v38  ;;  %v1017_v29 = vld [vmem:[%s1565_s2] sm:$0xff]  ;;  %v1018_v30 = vld [vmem:[%s1565_s2 + $0x8] sm:$0xff] }
  0x9d   : > { %1021 = vperm.xlu1 %1301, %v1017_v29   ;;  %1026 = vperm.xlu2 %1302, %v1018_v30   ;;  %v1236_v39 = vld [vmem:[%s1564_s1 + $0x60] sm:$0xff] }
  0x9e   : > { %1188 = vmatpush.msk.msra.mxu0 %vm324_vm3, %v312_v42  ;;  %1266 = vmatpush.msk.msra.mxu2 %vm324_vm3, %v312_v42 }
  0x9f   : > { %1191 = vmatpush.msk.msra.mxu1 %vm324_vm3, %v313_v43  ;;  %1267 = vmatpush.msk.msra.mxu3 %vm324_vm3, %v313_v43 }
  0xa0   : > { %1190 = vmatmul.msk.f32.vlgmr.msra.gmra.mxu2 %vm317_vm4, %v1187_v46  ;;  %1193 = vmatmul.msk.f32.vlgmr.msra.gmra.mxu3 %vm317_vm4, %v1187_v46  ;;  %v1245_v46 = vld [vmem:[%s1564_s1 + $0x70] sm:$0xff] }
  0xa1   : > { %1194 = vmatpush.msk.msrb.mxu2 %vm324_vm3, %v289_v44  ;;  %1197 = vmatpush.msk.msrb.mxu3 %vm324_vm3, %v290_v45  ;;  %v1237_v45 = vld [vmem:[%s1564_s1 + $0x68] sm:$0xff] }
  0xa2   : > { %1203 = vmatpush.msk.msrb.mxu0 %vm324_vm3, %v454_v48  ;;  %1206 = vmatpush.msk.msrb.mxu1 %vm324_vm3, %v455_v49  ;;  %v529_v53 = vpop.permute.xlu1 %528  ;;  %v527_v54 = vpop.permute.xlu0 %526  ;;  %v1246_v48 = vld [vmem:[%s1564_s1 + $0x78] sm:$0xff]  ;;  %v1255_v49 = vld [vmem:[%s1564_s1 + $0x88] sm:$0xff] }
  0xa3   : > { %v531_v55 = vsel %vm530_vm5, %v527_v54, %v529_v53  ;;  %v532_v56 = vsel %vm530_vm5, %v529_v53, %v527_v54  ;;  %1189 = vmatmul.msk.f32.vlgmr.msra.gmra.mxu0 %vm317_vm4, %v1186_v52  ;;  %1192 = vmatmul.msk.f32.vlgmr.msra.gmra.mxu1 %vm317_vm4, %v1186_v52 }
  0xa4   : > { %v540_v57 = vmul.f32 %v536_v50, %v532_v56  ;;  %v541_v58 = vmul.f32 %v537_v51, %v531_v55  ;;  %1220 = vmatpush.msk.msra.mxu0 %vm324_vm3, %v1394_v9  ;;  %1223 = vmatpush.msk.msra.mxu1 %vm324_vm3, %v1396_v10  ;;  %v1235_v9 = vld [vmem:[%s1566_s3 + $0xc] sm:$0x3]  ;;  %v767_v10 = vpop.permute.xlu2 %766 }
  0xa5   : > { %v774_v11 = vperm.slane %v1235_v9, 0  ;;  %v775_v12 = vperm.slane %v1235_v9, 1 }
  0xa6   : > { %1212 = vmatpush.msk.msra.mxu2 %vm324_vm3, %v540_v57  ;;  %1215 = vmatpush.msk.msra.mxu3 %vm324_vm3, %v541_v58 }
  0xa8   : > { %1195 = vmatmul.msk.f32.vlgmr.msrb.gmra.mxu2 %vm317_vm4, %v291_v59  ;;  %1198 = vmatmul.msk.f32.vlgmr.msrb.gmra.mxu3 %vm317_vm4, %v291_v59 }
  0xab   : > { %1204 = vmatmul.msk.f32.vlgmr.msrb.gmra.mxu0 %vm317_vm4, %v1201_v60  ;;  %1207 = vmatmul.msk.f32.vlgmr.msrb.gmra.mxu1 %vm317_vm4, %v1201_v60 }
  0xb0   : > { %1196 = vmatmul.msk.f32.gmra.mxu2 %vm317_vm4, %v292_v61  ;;  %1199 = vmatmul.msk.f32.gmra.mxu3 %vm317_vm4, %v292_v61 }
  0xb2   : > { %v681_v3 = vpop.permute.xlu0 %680  ;;  %v937_v38 = vpop.permute.xlu2 %936 }
  0xb3   : > { %v683_v4 = vsel %vm682_vm6, %v679_v63, %v681_v3  ;;  %v684_v5 = vsel %vm682_vm6, %v681_v3, %v679_v63  ;;  %1205 = vmatmul.msk.f32.gmra.mxu0 %vm317_vm4, %v1202_v2  ;;  %1208 = vmatmul.msk.f32.gmra.mxu1 %vm317_vm4, %v1202_v2 }
  0xb4   : > { %v692_v6 = vmul.f32 %v688_v0, %v683_v4  ;;  %v693_v7 = vmul.f32 %v689_v1, %v684_v5 }
  0xb6   : > { %1229 = vmatpush.msk.msrb.mxu2 %vm324_vm3, %v692_v6  ;;  %1232 = vmatpush.msk.msrb.mxu3 %vm324_vm3, %v693_v7 }
  0xb8   : > { %1213 = vmatmul.msk.f32.vlgmr.msra.gmra.mxu2 %vm317_vm4, %v1210_v8  ;;  %1216 = vmatmul.msk.f32.vlgmr.msra.gmra.mxu3 %vm317_vm4, %v1210_v8 }
  0xba   : > { %v765_v14 = vpop.permute.xlu1 %764 }
  0xbb   : > { %v769_v15 = vsel %vm768_vm7, %v765_v14, %v767_v10  ;;  %v770_v16 = vsel %vm768_vm7, %v767_v10, %v765_v14  ;;  %1221 = vmatmul.msk.f32.vlgmr.msra.gmra.mxu0 %vm317_vm4, %v1218_v13  ;;  %1224 = vmatmul.msk.f32.vlgmr.msra.gmra.mxu1 %vm317_vm4, %v1218_v13 }
  0xbc   : > { %v778_v17 = vmul.f32 %v774_v11, %v769_v15  ;;  %v779_v18 = vmul.f32 %v775_v12, %v770_v16 }
  0xbe   : > { %1238 = vmatpush.msk.msrb.mxu0 %vm324_vm3, %v778_v17  ;;  %1241 = vmatpush.msk.msrb.mxu1 %vm324_vm3, %v779_v18 }
  0xc0   : > { %1214 = vmatmul.msk.f32.gmra.mxu2 %vm317_vm4, %v1211_v19  ;;  %1217 = vmatmul.msk.f32.gmra.mxu3 %vm317_vm4, %v1211_v19 }
  0xc2   : > { %v853_v25 = vpop.permute.xlu1 %852  ;;  %v851_v26 = vpop.permute.xlu0 %850 }
  0xc3   : > { %v855_v27 = vsel %vm854_vm8, %v851_v26, %v853_v25  ;;  %v856_v28 = vsel %vm854_vm8, %v853_v25, %v851_v26  ;;  %1222 = vmatmul.msk.f32.gmra.mxu0 %vm317_vm4, %v1219_v24  ;;  %1225 = vmatmul.msk.f32.gmra.mxu1 %vm317_vm4, %v1219_v24 }
  0xc4   : > { %v864_v31 = vmul.f32 %v860_v21, %v855_v27  ;;  %v865_v32 = vmul.f32 %v861_v22, %v856_v28 }
  0xc6   : > { %1247 = vmatpush.msk.msra.mxu2 %vm324_vm3, %v864_v31  ;;  %1250 = vmatpush.msk.msra.mxu3 %vm324_vm3, %v865_v32 }
  0xc8   : > { %1230 = vmatmul.msk.f32.vlgmr.msrb.gmra.mxu2 %vm317_vm4, %v1227_v34  ;;  %1233 = vmatmul.msk.f32.vlgmr.msrb.gmra.mxu3 %vm317_vm4, %v1227_v34 }
  0xca   : > { %v939_v40 = vpop.permute.xlu0 %938 }
  0xcb   : > { %v941_v41 = vsel %vm940_vm9, %v937_v38, %v939_v40  ;;  %v942_v42 = vsel %vm940_vm9, %v939_v40, %v937_v38  ;;  %1239 = vmatmul.msk.f32.vlgmr.msrb.gmra.mxu0 %vm317_vm4, %v1236_v39  ;;  %1242 = vmatmul.msk.f32.vlgmr.msrb.gmra.mxu1 %vm317_vm4, %v1236_v39 }
  0xcc   : > { %v950_v43 = vmul.f32 %v946_v36, %v941_v41  ;;  %v951_v44 = vmul.f32 %v947_v37, %v942_v42 }
  0xce   : > { %1256 = vmatpush.msk.msra.mxu0 %vm324_vm3, %v950_v43  ;;  %1259 = vmatpush.msk.msra.mxu1 %vm324_vm3, %v951_v44 }
  0xd0   : > { %1231 = vmatmul.msk.f32.gmra.mxu2 %vm317_vm4, %v1228_v23  ;;  %1234 = vmatmul.msk.f32.gmra.mxu3 %vm317_vm4, %v1228_v23 }
  0xd3   : > { %1240 = vmatmul.msk.f32.gmra.mxu0 %vm317_vm4, %v1237_v45  ;;  %1243 = vmatmul.msk.f32.gmra.mxu1 %vm317_vm4, %v1237_v45 }
  0xd8   : > { %1248 = vmatmul.msk.f32.vlgmr.msra.gmra.mxu2 %vm317_vm4, %v1245_v46  ;;  %1251 = vmatmul.msk.f32.vlgmr.msra.gmra.mxu3 %vm317_vm4, %v1245_v46 }
  0xdb   : > { %1257 = vmatmul.msk.f32.vlgmr.msra.gmra.mxu0 %vm317_vm4, %v1254_v47  ;;  %1260 = vmatmul.msk.f32.vlgmr.msra.gmra.mxu1 %vm317_vm4, %v1254_v47 }
  0xe0   : > { %1249 = vmatmul.msk.f32.gmra.mxu2 %vm317_vm4, %v1246_v48  ;;  %1252 = vmatmul.msk.f32.gmra.mxu3 %vm317_vm4, %v1246_v48 }
  0xe3   : > { %1258 = vmatmul.msk.f32.gmra.mxu0 %vm317_vm4, %v1255_v49  ;;  %1261 = vmatmul.msk.f32.gmra.mxu1 %vm317_vm4, %v1255_v49 }
 0x10f   : > { %v1022_v41 = vpop.permute.xlu1 %1021 }
 0x120   : > { %v348_v50 = vpop.f32.mrf.mxu0  ;;  %v371_v51 = vpop.f32.mrf.mxu1 }
 0x123   : > { %v351_v52 = vpop.f32.mrf.mxu2  ;;  %v374_v53 = vpop.f32.mrf.mxu3 }
 0x128   : > { %v488_v54 = vpop.f32.mrf.mxu0  ;;  %v511_v55 = vpop.f32.mrf.mxu1 }
 0x12b   : > { %v406_v56 = vpop.f32.mrf.mxu2  ;;  %v429_v57 = vpop.f32.mrf.mxu3 }
 0x12c   : > { %v407_v8 = vadd.f32 %v406_v56, %v348_v50  ;;  %v430_v9 = vadd.f32 %v429_v57, %v371_v51  ;;  %v1027_v57 = vpop.permute.xlu2 %1026 }
 0x12e   : > { %v517_v12 = vadd.f32 %v488_v54, %v407_v8  ;;  %v518_v13 = vadd.f32 %v511_v55, %v430_v9 }
 0x130   : > { %v491_v58 = vpop.f32.mrf.mxu0  ;;  %v514_v59 = vpop.f32.mrf.mxu1 }
 0x133   : > { %v409_v60 = vpop.f32.mrf.mxu2  ;;  %v432_v61 = vpop.f32.mrf.mxu3 }
 0x134   : > { %v410_v18 = vadd.f32 %v409_v60, %v351_v52  ;;  %v433_v19 = vadd.f32 %v432_v61, %v374_v53 }
 0x136   : > { %v519_v25 = vadd.f32 %v491_v58, %v410_v18  ;;  %v520_v26 = vadd.f32 %v514_v59, %v433_v19 }
 0x138   : > { %v640_v62 = vpop.f32.mrf.mxu0  ;;  %v663_v63 = vpop.f32.mrf.mxu1 }
 0x13b   : > { %v574_v0 = vpop.f32.mrf.mxu2  ;;  %v597_v1 = vpop.f32.mrf.mxu3 }
 0x13c   : > { %v603_v14 = vadd.f32 %v574_v0, %v517_v12  ;;  %v604_v15 = vadd.f32 %v597_v1, %v518_v13 }
 0x13e   : > { %v669_v22 = vadd.f32 %v640_v62, %v603_v14  ;;  %v670_v24 = vadd.f32 %v663_v63, %v604_v15 }
 0x140   : > { %v643_v2 = vpop.f32.mrf.mxu0  ;;  %v666_v3 = vpop.f32.mrf.mxu1 }
 0x143   : > { %v577_v4 = vpop.f32.mrf.mxu2  ;;  %v600_v5 = vpop.f32.mrf.mxu3 }
 0x144   : > { %v605_v29 = vadd.f32 %v577_v4, %v519_v25  ;;  %v606_v30 = vadd.f32 %v600_v5, %v520_v26 }
 0x146   : > { %v671_v37 = vadd.f32 %v643_v2, %v605_v29  ;;  %v672_v38 = vadd.f32 %v666_v3, %v606_v30 }
 0x148   : > { %v812_v6 = vpop.f32.mrf.mxu0  ;;  %v835_v7 = vpop.f32.mrf.mxu1 }
 0x14b   : > { %v726_v10 = vpop.f32.mrf.mxu2  ;;  %v749_v11 = vpop.f32.mrf.mxu3 }
 0x14c   : > { %v755_v27 = vadd.f32 %v726_v10, %v669_v22  ;;  %v756_v28 = vadd.f32 %v749_v11, %v670_v24 }
 0x14e   : > { %v841_v33 = vadd.f32 %v812_v6, %v755_v27  ;;  %v842_v34 = vadd.f32 %v835_v7, %v756_v28 }
 0x150   : > { %v815_v16 = vpop.f32.mrf.mxu0  ;;  %v838_v17 = vpop.f32.mrf.mxu1 }
 0x153   : > { %v729_v20 = vpop.f32.mrf.mxu2  ;;  %v752_v21 = vpop.f32.mrf.mxu3 }
 0x154   : > { %v757_v42 = vadd.f32 %v729_v20, %v671_v37  ;;  %v758_v43 = vadd.f32 %v752_v21, %v672_v38 }
 0x156   : > { %v843_v47 = vadd.f32 %v815_v16, %v757_v42  ;;  %v844_v48 = vadd.f32 %v838_v17, %v758_v43 }
 0x158   : > { %v984_v31 = vpop.f32.mrf.mxu0  ;;  %v1007_v32 = vpop.f32.mrf.mxu1 }
 0x15b   : > { %v898_v35 = vpop.f32.mrf.mxu2  ;;  %v921_v36 = vpop.f32.mrf.mxu3 }
 0x15c   : > { %v927_v39 = vadd.f32 %v898_v35, %v841_v33  ;;  %v928_v40 = vadd.f32 %v921_v36, %v842_v34 }
 0x15e   : > { %v1013_v44 = vadd.f32 %v984_v31, %v927_v39  ;;  %v1014_v23 = vadd.f32 %v1007_v32, %v928_v40 }
 0x160   : > { %v1029_v45 = vadd.f32 %v1022_v41, %v1013_v44  ;;  %v1030_v46 = vadd.f32 %v1022_v41, %v1014_v23  ;;  %v987_v51 = vpop.f32.mrf.mxu0  ;;  %v1010_v52 = vpop.f32.mrf.mxu1 }
 0x162   : > { %v1033_v49 = vmul.f32 0.5, %v1029_v45  ;;  %v1034_v50 = vmul.f32 0.5, %v1030_v46 }
 0x163   : > { %v901_v53 = vpop.f32.mrf.mxu2  ;;  %v924_v54 = vpop.f32.mrf.mxu3 }
 0x164   : > { %1304 = vtanh.f32 %v1033_v49  ;;  %v929_v55 = vadd.f32 %v901_v53, %v843_v47  ;;  %v930_v56 = vadd.f32 %v924_v54, %v844_v48 }
 0x165   : > { %1306 = vtanh.f32 %v1034_v50 }
 0x166   : > { %v1015_v58 = vadd.f32 %v987_v51, %v929_v55  ;;  %v1016_v59 = vadd.f32 %v1010_v52, %v930_v56 }
 0x168   : > { %v1031_v60 = vadd.f32 %v1027_v57, %v1015_v58  ;;  %v1032_v61 = vadd.f32 %v1027_v57, %v1016_v59 }
 0x16a   : > { %v1305_v62 = vpop.eup %1304  ;;  %v1035_v63 = vmul.f32 0.5, %v1031_v60  ;;  %v1036_v0 = vmul.f32 0.5, %v1032_v61 }
 0x16b   : > { %v1307_v1 = vpop.eup %1306  ;;  %v1041_v2 = vadd.f32 1.0, %v1305_v62 }
 0x16c   : > { %v1042_v3 = vadd.f32 1.0, %v1307_v1  ;;  %1308 = vtanh.f32 %v1035_v63 }
 0x16d   : > { %v1045_v4 = vmul.f32 0.5, %v1041_v2  ;;  %1310 = vtanh.f32 %v1036_v0 }
 0x16e   : > { %v1046_v5 = vmul.f32 0.5, %v1042_v3 }
 0x16f   : > { %v1049_v6 = vmul.f32 %v1045_v4, %v1029_v45 }
 0x170   : > { %v1050_v7 = vmul.f32 %v1046_v5, %v1030_v46 }
 0x171   : > { %1053 = vst [vmem:[%s265_s24] sm:$0xff] %v1049_v6 }
 0x172   : > { %v1309_v8 = vpop.eup %1308  ;;  %1054 = vst [vmem:[%s265_s24 + $0x8] sm:$0xff] %v1050_v7 }
 0x173   : > { %v1311_v9 = vpop.eup %1310  ;;  %v1043_v10 = vadd.f32 1.0, %v1309_v8 }
 0x174   : > { %v1044_v11 = vadd.f32 1.0, %v1311_v9 }
 0x175   : > { %v1047_v12 = vmul.f32 0.5, %v1043_v10 }
 0x176   : > { %v1048_v13 = vmul.f32 0.5, %v1044_v11 }
 0x177   : > { %v1051_v14 = vmul.f32 %v1047_v12, %v1031_v60 }
 0x178   : > { %v1052_v15 = vmul.f32 %v1048_v13, %v1032_v61 }
 0x179   : > { %1055 = vst [vmem:[%s265_s24 + $0x10] sm:$0xff] %v1051_v14 }
 0x17a   : > { %1056 = vst [vmem:[%s265_s24 + $0x18] sm:$0xff] %v1052_v15 }
 0x17b PF: > { %s14_s17 = sadd.s32 1, %s1334_s17   ;;  %s1568_s15 = smov %s1330_s16 }
 0x17c   : > { %p11_p5 = scmp.ge.s32.totalorder %s14_s17, 4   ;;  %s1569_s16 = smov %s1571_s18 }
 0x17e   :  { %13 = sbr.rel (!%p11_p5) target bundleno = 2 (0x2), region = 87 }

</bundles_post_ra>
